<compile_context>
chip_gen: v5e
topology: v5e:2x2
jax: 0.10.0
libtpu: 0.0.40
codegen_flags: <defaults>
</compile_context>

<pallas_src>
import numpy as np
import jax
import jax.numpy as jnp
from jax.experimental import pallas as pl
from jax.experimental.pallas import tpu as pltpu


def make_attention_kernel(*, d_k, d_v, h, block_b, nq, nk, staging_dtype):
    scale = 1.0 / np.sqrt(d_k)
    mm = staging_dtype

    def kernel(xq_ref, xk_ref, xv_ref,
               wq_ref, bq_ref, wk_ref, bk_ref, wv_ref, bv_ref, wo_ref, bo_ref,
               out_ref, o_slab):
        # Lane-dense 2-D projections: one MXU matmul each (M = block_b*seq,
        # N = h*d_k / h*d_v), f32 accumulation, bias added post-accumulation.
        xq = xq_ref[...].astype(mm)
        xk = xk_ref[...].astype(mm)
        xv = xv_ref[...].astype(mm)

        # Fold the 1/sqrt(d_k) scale into q once (applies to bias too, matching
        # the reference which scales q @ k^T after the biased projection).
        q2 = (jnp.dot(xq, wq_ref[...], preferred_element_type=jnp.float32)
              + bq_ref[...]) * scale                                # (M, h*d_k)
        k2 = (jnp.dot(xk, wk_ref[...], preferred_element_type=jnp.float32)
              + bk_ref[...])                                        # (Mk, h*d_k)
        v2 = (jnp.dot(xv, wv_ref[...], preferred_element_type=jnp.float32)
              + bv_ref[...])                                        # (Mk, h*d_v)

        # Per-head attention, batched over the block's batch dim.  Each head is
        # a pair of leading-batch 3-D MXU einsums (no per-batch Python loop).
        for hi in range(h):
            qh = q2[:, hi * d_k:(hi + 1) * d_k].reshape(block_b, nq, d_k).astype(mm)
            kh = k2[:, hi * d_k:(hi + 1) * d_k].reshape(block_b, nk, d_k).astype(mm)
            vh = v2[:, hi * d_v:(hi + 1) * d_v].reshape(block_b, nk, d_v).astype(mm)

            att = jnp.einsum('bqd,bkd->bqk', qh, kh,
                             preferred_element_type=jnp.float32)    # (B, nq, nk)
            att = att - jnp.max(att, axis=-1, keepdims=True)
            p = jnp.exp(att)
            denom = jnp.sum(p, axis=-1, keepdims=True)
            ctx = jnp.einsum('bqk,bkd->bqd', p.astype(mm), vh,
                             preferred_element_type=jnp.float32)    # (B, nq, d_v)
            ctx = ctx / denom          # exact softmax normalization (no approx)
            o_slab[:, hi * d_v:(hi + 1) * d_v] = ctx.reshape(block_b * nq, d_v)

        # Single output projection for the whole block:
        #   (M, h*d_v) @ (h*d_v, d_model) + bo   (one MXU drain, no head-sum).
        out = jnp.dot(o_slab[...].astype(mm), wo_ref[...],
                      preferred_element_type=jnp.float32) + bo_ref[...]
        out_ref[...] = out.astype(out_ref.dtype)

    return kernel


def _vmem_capacity_bytes():
    try:
        return int(pltpu.get_tpu_info().vmem_capacity_bytes)
    except Exception:
        return 64 * 1024 * 1024        # conservative default (v7x per-core VMEM)


def _step_vmem_bytes(block_b, nq, nk, d_model, d_k, d_v, h, w_el_bytes):
    """Rough per-grid-step VMEM footprint: double-buffered q/k/v inputs and
    output, (double-buffered) weights, the o_slab scratch, and in-kernel
    intermediates (q2/k2/v2 + their staging copies + att/p tiles)."""
    rows_q, rows_k = block_b * nq, block_b * nk
    io = 2 * (rows_q + 2 * rows_k) * d_model * 4          # q/k/v inputs, x2 bufs
    io += 2 * rows_q * d_model * 4                        # output, x2 bufs
    w = 2 * (2 * d_model * h * d_k + 2 * d_model * h * d_v) * w_el_bytes
    b = 2 * (2 * h * d_k + h * d_v + d_model) * 4
    slab = rows_q * h * d_v * 4                           # o_slab scratch
    inter = (rows_q * h * d_k + rows_k * h * d_k + rows_k * h * d_v) * 4 * 2
    inter += block_b * nq * nk * 4 * 3                    # att / p / max-sum tiles
    return io + w + b + slab + inter


def _pick_block_b(b_s, nq, nk, d_model, d_k, d_v, h, w_el_bytes, vmem_budget,
                  max_rows=4096):
    """Largest divisor of b_s whose per-step footprint fits the VMEM budget and
    respects the (8,128) second-minor tiling rule.  No forced >=2 split: on
    single-TC v5e/v6e extra grid steps are pure ~0.35us/step overhead; on v7x
    the ("parallel",) grid axis is core-sharded whenever >=2 steps remain."""
    best = None
    for d in range(1, b_s + 1):
        if b_s % d:
            continue
        rows_ok = (d == b_s) or ((d * nq) % 8 == 0 and (d * nk) % 8 == 0)
        if not rows_ok:
            continue
        if d * max(nq, nk) > max_rows and d != 1:
            continue
        if _step_vmem_bytes(d, nq, nk, d_model, d_k, d_v, h, w_el_bytes) <= vmem_budget:
            best = d
    return best if best is not None else b_s


def scaled_dot_product_attention(queries, keys, values, params, *, d_k, d_v, h,
                                 block_b=None, staging_dtype=jnp.bfloat16):
    """Fused q/k/v/o projections + multi-head scaled dot-product attention.

    queries: (b_s, nq, d_model); keys/values: (b_s, nk, d_model).
    params = (wq, bq, wk, bk, wv, bv, wo, bo); weights stored (in, out).
    staging_dtype: dtype MXU operands are staged in (bf16 default = perf mode,
    jnp.float32 = exact path).  Accumulation is always f32.
    """
    b_s, nq, d_model = queries.shape
    nk = keys.shape[1]
    wq, bq, wk, bk, wv, bv, wo, bo = params

    w_el_bytes = jnp.dtype(staging_dtype).itemsize
    vmem_cap = _vmem_capacity_bytes()
    if block_b is None:
        block_b = _pick_block_b(b_s, nq, nk, d_model, d_k, d_v, h, w_el_bytes,
                                vmem_budget=int(0.55 * vmem_cap))
    assert b_s % block_b == 0
    # (8,128) rule: second-minor block dims must be 8-divisible or full-extent.
    assert block_b == b_s or ((block_b * nq) % 8 == 0 and (block_b * nk) % 8 == 0), \
        "block_b*seq must be a multiple of 8 (or block_b == b_s)"

    # One-time wrapper-side cast of weights to the MXU staging dtype (halves
    # their VMEM/DMA cost in bf16 mode); biases stay f32 (post-accumulation add).
    wq_c = wq.astype(staging_dtype)
    wk_c = wk.astype(staging_dtype)
    wv_c = wv.astype(staging_dtype)
    wo_c = wo.astype(staging_dtype)
    bq_2 = bq.reshape(1, h * d_k).astype(jnp.float32)
    bk_2 = bk.reshape(1, h * d_k).astype(jnp.float32)
    bv_2 = bv.reshape(1, h * d_v).astype(jnp.float32)
    bo_2 = bo.reshape(1, d_model).astype(jnp.float32)

    # Flatten batch*seq so projections are tall, lane-dense 2-D matmuls.
    q2 = queries.reshape(b_s * nq, d_model)
    k2 = keys.reshape(b_s * nk, d_model)
    v2 = values.reshape(b_s * nk, d_model)

    def const_spec(arr):
        # Constant block index across the grid -> fetched once by the pipeline.
        # (Could be pl.Buffered(1) to drop the second buffer; weights are tiny.)
        return pl.BlockSpec(arr.shape, lambda i: (0, 0))

    grid_spec = pltpu.PrefetchScalarGridSpec(
        num_scalar_prefetch=0,
        grid=(b_s // block_b,),
        in_specs=[
            pl.BlockSpec((block_b * nq, d_model), lambda i: (i, 0)),
            pl.BlockSpec((block_b * nk, d_model), lambda i: (i, 0)),
            pl.BlockSpec((block_b * nk, d_model), lambda i: (i, 0)),
            const_spec(wq_c), const_spec(bq_2),
            const_spec(wk_c), const_spec(bk_2),
            const_spec(wv_c), const_spec(bv_2),
            const_spec(wo_c), const_spec(bo_2),
        ],
        out_specs=pl.BlockSpec((block_b * nq, d_model), lambda i: (i, 0)),
        # Lane-dense (M, h*d_v) context slab -> one matmul against full Wo.
        scratch_shapes=[pltpu.VMEM((block_b * nq, h * d_v), jnp.float32)],
    )

    step_bytes = _step_vmem_bytes(block_b, nq, nk, d_model, d_k, d_v, h, w_el_bytes)
    vmem_limit = int(min(max(2 * step_bytes, 32 * 1024 * 1024), 0.9 * vmem_cap))

    kernel = make_attention_kernel(d_k=d_k, d_v=d_v, h=h, block_b=block_b,
                                   nq=nq, nk=nk, staging_dtype=staging_dtype)
    out2 = pl.pallas_call(
        kernel,
        out_shape=jax.ShapeDtypeStruct((b_s * nq, d_model), jnp.float32),
        grid_spec=grid_spec,
        compiler_params=pltpu.CompilerParams(
            dimension_semantics=("parallel",),
            vmem_limit_bytes=vmem_limit),
    )(q2, k2, v2, wq_c, bq_2, wk_c, bk_2, wv_c, bv_2, wo_c, bo_2)
    return out2.reshape(b_s, nq, d_model)


def init_params(key, d_model, d_k, d_v, h):
    """Xavier-uniform weights, zero biases (matches module.init_weights)."""
    def xavier(k, fan_in, fan_out):
        bound = np.sqrt(6.0 / (fan_in + fan_out))
        # stored as (in, out) so forward is x @ W + b
        return jax.random.uniform(k, (fan_in, fan_out), jnp.float32, -bound, bound)

    kq, kk, kv, ko = jax.random.split(key, 4)
    wq = xavier(kq, d_model, h * d_k)
    wk = xavier(kk, d_model, h * d_k)
    wv = xavier(kv, d_model, h * d_v)
    wo = xavier(ko, h * d_v, d_model)
    bq = jnp.zeros((1, h * d_k), jnp.float32)
    bk = jnp.zeros((1, h * d_k), jnp.float32)
    bv = jnp.zeros((1, h * d_v), jnp.float32)
    bo = jnp.zeros((1, d_model), jnp.float32)
    return (wq, bq, wk, bk, wv, bv, wo, bo)


def reference_attention(queries, keys, values, params, *, d_k, d_v, h):
    """Pure-JAX reference mirroring the PyTorch forward exactly."""
    wq, bq, wk, bk, wv, bv, wo, bo = params
    b_s, nq, d_model = queries.shape
    nk = keys.shape[1]
    q = (queries @ wq + bq).reshape(b_s, nq, h, d_k).transpose(0, 2, 1, 3)
    k = (keys @ wk + bk).reshape(b_s, nk, h, d_k).transpose(0, 2, 3, 1)
    v = (values @ wv + bv).reshape(b_s, nk, h, d_v).transpose(0, 2, 1, 3)
    att = jnp.matmul(q, k) / np.sqrt(d_k)
    att = jax.nn.softmax(att, axis=-1)
    out = jnp.matmul(att, v).transpose(0, 2, 1, 3).reshape(b_s, nq, h * d_v)
    return out @ wo + bo


if __name__ == "__main__":
    d_model, d_k, d_v, h = 32, 8, 8, 4
    b_s, nq, nk = 2, 8, 8

    key = jax.random.PRNGKey(0)
    kp, kq, kk_, kv_ = jax.random.split(key, 4)
    params = init_params(kp, d_model, d_k, d_v, h)

    queries = jax.random.normal(kq, (b_s, nq, d_model), jnp.float32)
    keys = jax.random.normal(kk_, (b_s, nk, d_model), jnp.float32)
    values = jax.random.normal(kv_, (b_s, nk, d_model), jnp.float32)

    ref = reference_attention(queries, keys, values, params, d_k=d_k, d_v=d_v, h=h)

    # Exact path: f32 operand staging, exact softmax normalization.
    out_f32 = scaled_dot_product_attention(queries, keys, values, params,
                                           d_k=d_k, d_v=d_v, h=h,
                                           staging_dtype=jnp.float32)
    out_f32 = jax.block_until_ready(out_f32)
    np.testing.assert_allclose(np.asarray(out_f32), np.asarray(ref),
                               rtol=5e-3, atol=5e-3)

    # Default perf mode: bf16-staged MXU operands, f32 accumulation.  Expect
    # ~1e-2-level absolute deviations from the pure-f32 reference.
    out_bf16 = scaled_dot_product_attention(queries, keys, values, params,
                                            d_k=d_k, d_v=d_v, h=h)
    out_bf16 = jax.block_until_ready(out_bf16)
    np.testing.assert_allclose(np.asarray(out_bf16), np.asarray(ref),
                               rtol=4e-2, atol=4e-2)

    print("KERNEL_OK")
</pallas_src>

<mosaic_0001>
module attributes {stable_mosaic.version = 11 : i64} {
  func.func @kernel(%arg0: i32, %arg1: memref<16x32xf32, #tpu.memory_space<vmem>>, %arg2: memref<16x32xf32, #tpu.memory_space<vmem>>, %arg3: memref<16x32xf32, #tpu.memory_space<vmem>>, %arg4: memref<32x32xf32, #tpu.memory_space<vmem>>, %arg5: memref<1x32xf32, #tpu.memory_space<vmem>>, %arg6: memref<32x32xf32, #tpu.memory_space<vmem>>, %arg7: memref<1x32xf32, #tpu.memory_space<vmem>>, %arg8: memref<32x32xf32, #tpu.memory_space<vmem>>, %arg9: memref<1x32xf32, #tpu.memory_space<vmem>>, %arg10: memref<32x32xf32, #tpu.memory_space<vmem>>, %arg11: memref<1x32xf32, #tpu.memory_space<vmem>>, %arg12: memref<16x32xf32, #tpu.memory_space<vmem>>, %arg13: memref<16x32xf32, #tpu.memory_space<vmem>>) attributes {dimension_semantics = [#tpu.dimension_semantics<parallel>], iteration_bounds = array<i64: 1>, scalar_prefetch = 0 : i64, scratch_operands = 1 : i64, tpu.core_type = #tpu.core_type<tc>, window_params = [{transform_indices = @transform_0, window_bounds = array<i64: 16, 32>}, {transform_indices = @transform_1, window_bounds = array<i64: 16, 32>}, {transform_indices = @transform_2, window_bounds = array<i64: 16, 32>}, {pipeline_mode = #tpu.pipeline_mode<synchronous>, transform_indices = @transform_3, window_bounds = array<i64: 32, 32>}, {pipeline_mode = #tpu.pipeline_mode<synchronous>, transform_indices = @transform_4, window_bounds = array<i64: 1, 32>}, {pipeline_mode = #tpu.pipeline_mode<synchronous>, transform_indices = @transform_5, window_bounds = array<i64: 32, 32>}, {pipeline_mode = #tpu.pipeline_mode<synchronous>, transform_indices = @transform_6, window_bounds = array<i64: 1, 32>}, {pipeline_mode = #tpu.pipeline_mode<synchronous>, transform_indices = @transform_7, window_bounds = array<i64: 32, 32>}, {pipeline_mode = #tpu.pipeline_mode<synchronous>, transform_indices = @transform_8, window_bounds = array<i64: 1, 32>}, {pipeline_mode = #tpu.pipeline_mode<synchronous>, transform_indices = @transform_9, window_bounds = array<i64: 32, 32>}, {pipeline_mode = #tpu.pipeline_mode<synchronous>, transform_indices = @transform_10, window_bounds = array<i64: 1, 32>}, {transform_indices = @transform_11, window_bounds = array<i64: 16, 32>}]} {
    %c0 = arith.constant 0 : index
    %c0_0 = arith.constant 0 : index
    %0 = vector.load %arg1[%c0, %c0_0] : memref<16x32xf32, #tpu.memory_space<vmem>>, vector<16x32xf32>
    %c0_1 = arith.constant 0 : index
    %c0_2 = arith.constant 0 : index
    %1 = vector.load %arg2[%c0_1, %c0_2] : memref<16x32xf32, #tpu.memory_space<vmem>>, vector<16x32xf32>
    %c0_3 = arith.constant 0 : index
    %c0_4 = arith.constant 0 : index
    %2 = vector.load %arg3[%c0_3, %c0_4] : memref<16x32xf32, #tpu.memory_space<vmem>>, vector<16x32xf32>
    %c0_5 = arith.constant 0 : index
    %c0_6 = arith.constant 0 : index
    %3 = vector.load %arg4[%c0_5, %c0_6] : memref<32x32xf32, #tpu.memory_space<vmem>>, vector<32x32xf32>
    %cst = arith.constant dense<0.000000e+00> : vector<16x32xf32>
    %4 = tpu.matmul %0, %3, %cst {dimension_numbers = #tpu.dot_dimension_numbers<[1], [0], [0], [1], [0, 0, 1, 1], [], []>} : vector<16x32xf32>, vector<32x32xf32>, vector<16x32xf32> -> vector<16x32xf32>
    %c0_7 = arith.constant 0 : index
    %c0_8 = arith.constant 0 : index
    %5 = vector.load %arg5[%c0_7, %c0_8] : memref<1x32xf32, #tpu.memory_space<vmem>>, vector<1x32xf32>
    %6 = vector.broadcast %5 : vector<1x32xf32> to vector<16x32xf32>
    %7 = arith.addf %4, %6 : vector<16x32xf32>
    %cst_9 = arith.constant 0.353553385 : f32
    %8 = vector.broadcast %cst_9 : f32 to vector<16x32xf32>
    %9 = arith.mulf %7, %8 : vector<16x32xf32>
    %c0_10 = arith.constant 0 : index
    %c0_11 = arith.constant 0 : index
    %10 = vector.load %arg6[%c0_10, %c0_11] : memref<32x32xf32, #tpu.memory_space<vmem>>, vector<32x32xf32>
    %cst_12 = arith.constant dense<0.000000e+00> : vector<16x32xf32>
    %11 = tpu.matmul %1, %10, %cst_12 {dimension_numbers = #tpu.dot_dimension_numbers<[1], [0], [0], [1], [0, 0, 1, 1], [], []>} : vector<16x32xf32>, vector<32x32xf32>, vector<16x32xf32> -> vector<16x32xf32>
    %c0_13 = arith.constant 0 : index
    %c0_14 = arith.constant 0 : index
    %12 = vector.load %arg7[%c0_13, %c0_14] : memref<1x32xf32, #tpu.memory_space<vmem>>, vector<1x32xf32>
    %13 = vector.broadcast %12 : vector<1x32xf32> to vector<16x32xf32>
    %14 = arith.addf %11, %13 : vector<16x32xf32>
    %c0_15 = arith.constant 0 : index
    %c0_16 = arith.constant 0 : index
    %15 = vector.load %arg8[%c0_15, %c0_16] : memref<32x32xf32, #tpu.memory_space<vmem>>, vector<32x32xf32>
    %cst_17 = arith.constant dense<0.000000e+00> : vector<16x32xf32>
    %16 = tpu.matmul %2, %15, %cst_17 {dimension_numbers = #tpu.dot_dimension_numbers<[1], [0], [0], [1], [0, 0, 1, 1], [], []>} : vector<16x32xf32>, vector<32x32xf32>, vector<16x32xf32> -> vector<16x32xf32>
    %c0_18 = arith.constant 0 : index
    %c0_19 = arith.constant 0 : index
    %17 = vector.load %arg9[%c0_18, %c0_19] : memref<1x32xf32, #tpu.memory_space<vmem>>, vector<1x32xf32>
    %18 = vector.broadcast %17 : vector<1x32xf32> to vector<16x32xf32>
    %19 = arith.addf %16, %18 : vector<16x32xf32>
    %20 = vector.extract_strided_slice %9 {offsets = [0, 0], sizes = [16, 8], strides = [1, 1]} : vector<16x32xf32> to vector<16x8xf32>
    %21 = vector.shape_cast %20 : vector<16x8xf32> to vector<2x8x8xf32>
    %22 = vector.extract_strided_slice %14 {offsets = [0, 0], sizes = [16, 8], strides = [1, 1]} : vector<16x32xf32> to vector<16x8xf32>
    %23 = vector.shape_cast %22 : vector<16x8xf32> to vector<2x8x8xf32>
    %24 = vector.extract_strided_slice %19 {offsets = [0, 0], sizes = [16, 8], strides = [1, 1]} : vector<16x32xf32> to vector<16x8xf32>
    %25 = vector.shape_cast %24 : vector<16x8xf32> to vector<2x8x8xf32>
    "tpu.trace_start"() <{level = 10 : i32, message = "bqd,bkd->bqk"}> : () -> ()
    %cst_20 = arith.constant dense<0.000000e+00> : vector<2x8x8xf32>
    %26 = tpu.matmul %21, %23, %cst_20 {dimension_numbers = #tpu.dot_dimension_numbers<[2], [2], [1], [1], [0, 0, 0, 1, 1, 1], [0], [0]>} : vector<2x8x8xf32>, vector<2x8x8xf32>, vector<2x8x8xf32> -> vector<2x8x8xf32>
    "tpu.trace_stop"() : () -> ()
    %cst_21 = arith.constant dense<0xFF800000> : vector<2x8xf32>
    %27 = vector.multi_reduction <maximumf>, %26, %cst_21 [2] : vector<2x8x8xf32> to vector<2x8xf32>
    %28 = vector.shape_cast %27 : vector<2x8xf32> to vector<2x8x1xf32>
    %29 = vector.broadcast %28 : vector<2x8x1xf32> to vector<2x8x8xf32>
    %30 = arith.subf %26, %29 : vector<2x8x8xf32>
    %31 = math.exp %30 : vector<2x8x8xf32>
    %cst_22 = arith.constant dense<0.000000e+00> : vector<2x8xf32>
    %32 = vector.multi_reduction <add>, %31, %cst_22 [2] : vector<2x8x8xf32> to vector<2x8xf32>
    %33 = vector.shape_cast %32 : vector<2x8xf32> to vector<2x8x1xf32>
    "tpu.trace_start"() <{level = 10 : i32, message = "bqk,bkd->bqd"}> : () -> ()
    %cst_23 = arith.constant dense<0.000000e+00> : vector<2x8x8xf32>
    %34 = tpu.matmul %31, %25, %cst_23 {dimension_numbers = #tpu.dot_dimension_numbers<[2], [1], [1], [2], [0, 0, 0, 1, 1, 2], [0], [0]>} : vector<2x8x8xf32>, vector<2x8x8xf32>, vector<2x8x8xf32> -> vector<2x8x8xf32>
    "tpu.trace_stop"() : () -> ()
    %35 = vector.broadcast %33 : vector<2x8x1xf32> to vector<2x8x8xf32>
    %36 = arith.divf %34, %35 : vector<2x8x8xf32>
    %37 = vector.shape_cast %36 : vector<2x8x8xf32> to vector<16x8xf32>
    %c0_24 = arith.constant 0 : index
    %c0_25 = arith.constant 0 : index
    %38 = vector.load %arg13[%c0_24, %c0_25] : memref<16x32xf32, #tpu.memory_space<vmem>>, vector<16x8xf32>
    tpu.vector_store %arg13[%c0_24, %c0_25], %37 {strides = array<i32>} : memref<16x32xf32, #tpu.memory_space<vmem>>, vector<16x8xf32>,
    %39 = vector.extract_strided_slice %9 {offsets = [0, 8], sizes = [16, 8], strides = [1, 1]} : vector<16x32xf32> to vector<16x8xf32>
    %40 = vector.shape_cast %39 : vector<16x8xf32> to vector<2x8x8xf32>
    %41 = vector.extract_strided_slice %14 {offsets = [0, 8], sizes = [16, 8], strides = [1, 1]} : vector<16x32xf32> to vector<16x8xf32>
    %42 = vector.shape_cast %41 : vector<16x8xf32> to vector<2x8x8xf32>
    %43 = vector.extract_strided_slice %19 {offsets = [0, 8], sizes = [16, 8], strides = [1, 1]} : vector<16x32xf32> to vector<16x8xf32>
    %44 = vector.shape_cast %43 : vector<16x8xf32> to vector<2x8x8xf32>
    "tpu.trace_start"() <{level = 10 : i32, message = "bqd,bkd->bqk"}> : () -> ()
    %cst_26 = arith.constant dense<0.000000e+00> : vector<2x8x8xf32>
    %45 = tpu.matmul %40, %42, %cst_26 {dimension_numbers = #tpu.dot_dimension_numbers<[2], [2], [1], [1], [0, 0, 0, 1, 1, 1], [0], [0]>} : vector<2x8x8xf32>, vector<2x8x8xf32>, vector<2x8x8xf32> -> vector<2x8x8xf32>
    "tpu.trace_stop"() : () -> ()
    %cst_27 = arith.constant dense<0xFF800000> : vector<2x8xf32>
    %46 = vector.multi_reduction <maximumf>, %45, %cst_27 [2] : vector<2x8x8xf32> to vector<2x8xf32>
    %47 = vector.shape_cast %46 : vector<2x8xf32> to vector<2x8x1xf32>
    %48 = vector.broadcast %47 : vector<2x8x1xf32> to vector<2x8x8xf32>
    %49 = arith.subf %45, %48 : vector<2x8x8xf32>
    %50 = math.exp %49 : vector<2x8x8xf32>
    %cst_28 = arith.constant dense<0.000000e+00> : vector<2x8xf32>
    %51 = vector.multi_reduction <add>, %50, %cst_28 [2] : vector<2x8x8xf32> to vector<2x8xf32>
    %52 = vector.shape_cast %51 : vector<2x8xf32> to vector<2x8x1xf32>
    "tpu.trace_start"() <{level = 10 : i32, message = "bqk,bkd->bqd"}> : () -> ()
    %cst_29 = arith.constant dense<0.000000e+00> : vector<2x8x8xf32>
    %53 = tpu.matmul %50, %44, %cst_29 {dimension_numbers = #tpu.dot_dimension_numbers<[2], [1], [1], [2], [0, 0, 0, 1, 1, 2], [0], [0]>} : vector<2x8x8xf32>, vector<2x8x8xf32>, vector<2x8x8xf32> -> vector<2x8x8xf32>
    "tpu.trace_stop"() : () -> ()
    %54 = vector.broadcast %52 : vector<2x8x1xf32> to vector<2x8x8xf32>
    %55 = arith.divf %53, %54 : vector<2x8x8xf32>
    %56 = vector.shape_cast %55 : vector<2x8x8xf32> to vector<16x8xf32>
    %c0_30 = arith.constant 0 : index
    %c8 = arith.constant 8 : index
    %57 = vector.load %arg13[%c0_30, %c8] : memref<16x32xf32, #tpu.memory_space<vmem>>, vector<16x8xf32>
    tpu.vector_store %arg13[%c0_30, %c8], %56 {strides = array<i32>} : memref<16x32xf32, #tpu.memory_space<vmem>>, vector<16x8xf32>,
    %58 = vector.extract_strided_slice %9 {offsets = [0, 16], sizes = [16, 8], strides = [1, 1]} : vector<16x32xf32> to vector<16x8xf32>
    %59 = vector.shape_cast %58 : vector<16x8xf32> to vector<2x8x8xf32>
    %60 = vector.extract_strided_slice %14 {offsets = [0, 16], sizes = [16, 8], strides = [1, 1]} : vector<16x32xf32> to vector<16x8xf32>
    %61 = vector.shape_cast %60 : vector<16x8xf32> to vector<2x8x8xf32>
    %62 = vector.extract_strided_slice %19 {offsets = [0, 16], sizes = [16, 8], strides = [1, 1]} : vector<16x32xf32> to vector<16x8xf32>
    %63 = vector.shape_cast %62 : vector<16x8xf32> to vector<2x8x8xf32>
    "tpu.trace_start"() <{level = 10 : i32, message = "bqd,bkd->bqk"}> : () -> ()
    %cst_31 = arith.constant dense<0.000000e+00> : vector<2x8x8xf32>
    %64 = tpu.matmul %59, %61, %cst_31 {dimension_numbers = #tpu.dot_dimension_numbers<[2], [2], [1], [1], [0, 0, 0, 1, 1, 1], [0], [0]>} : vector<2x8x8xf32>, vector<2x8x8xf32>, vector<2x8x8xf32> -> vector<2x8x8xf32>
    "tpu.trace_stop"() : () -> ()
    %cst_32 = arith.constant dense<0xFF800000> : vector<2x8xf32>
    %65 = vector.multi_reduction <maximumf>, %64, %cst_32 [2] : vector<2x8x8xf32> to vector<2x8xf32>
    %66 = vector.shape_cast %65 : vector<2x8xf32> to vector<2x8x1xf32>
    %67 = vector.broadcast %66 : vector<2x8x1xf32> to vector<2x8x8xf32>
    %68 = arith.subf %64, %67 : vector<2x8x8xf32>
    %69 = math.exp %68 : vector<2x8x8xf32>
    %cst_33 = arith.constant dense<0.000000e+00> : vector<2x8xf32>
    %70 = vector.multi_reduction <add>, %69, %cst_33 [2] : vector<2x8x8xf32> to vector<2x8xf32>
    %71 = vector.shape_cast %70 : vector<2x8xf32> to vector<2x8x1xf32>
    "tpu.trace_start"() <{level = 10 : i32, message = "bqk,bkd->bqd"}> : () -> ()
    %cst_34 = arith.constant dense<0.000000e+00> : vector<2x8x8xf32>
    %72 = tpu.matmul %69, %63, %cst_34 {dimension_numbers = #tpu.dot_dimension_numbers<[2], [1], [1], [2], [0, 0, 0, 1, 1, 2], [0], [0]>} : vector<2x8x8xf32>, vector<2x8x8xf32>, vector<2x8x8xf32> -> vector<2x8x8xf32>
    "tpu.trace_stop"() : () -> ()
    %73 = vector.broadcast %71 : vector<2x8x1xf32> to vector<2x8x8xf32>
    %74 = arith.divf %72, %73 : vector<2x8x8xf32>
    %75 = vector.shape_cast %74 : vector<2x8x8xf32> to vector<16x8xf32>
    %c0_35 = arith.constant 0 : index
    %c16 = arith.constant 16 : index
    %76 = vector.load %arg13[%c0_35, %c16] : memref<16x32xf32, #tpu.memory_space<vmem>>, vector<16x8xf32>
    tpu.vector_store %arg13[%c0_35, %c16], %75 {strides = array<i32>} : memref<16x32xf32, #tpu.memory_space<vmem>>, vector<16x8xf32>,
    %77 = vector.extract_strided_slice %9 {offsets = [0, 24], sizes = [16, 8], strides = [1, 1]} : vector<16x32xf32> to vector<16x8xf32>
    %78 = vector.shape_cast %77 : vector<16x8xf32> to vector<2x8x8xf32>
    %79 = vector.extract_strided_slice %14 {offsets = [0, 24], sizes = [16, 8], strides = [1, 1]} : vector<16x32xf32> to vector<16x8xf32>
    %80 = vector.shape_cast %79 : vector<16x8xf32> to vector<2x8x8xf32>
    %81 = vector.extract_strided_slice %19 {offsets = [0, 24], sizes = [16, 8], strides = [1, 1]} : vector<16x32xf32> to vector<16x8xf32>
    %82 = vector.shape_cast %81 : vector<16x8xf32> to vector<2x8x8xf32>
    "tpu.trace_start"() <{level = 10 : i32, message = "bqd,bkd->bqk"}> : () -> ()
    %cst_36 = arith.constant dense<0.000000e+00> : vector<2x8x8xf32>
    %83 = tpu.matmul %78, %80, %cst_36 {dimension_numbers = #tpu.dot_dimension_numbers<[2], [2], [1], [1], [0, 0, 0, 1, 1, 1], [0], [0]>} : vector<2x8x8xf32>, vector<2x8x8xf32>, vector<2x8x8xf32> -> vector<2x8x8xf32>
    "tpu.trace_stop"() : () -> ()
    %cst_37 = arith.constant dense<0xFF800000> : vector<2x8xf32>
    %84 = vector.multi_reduction <maximumf>, %83, %cst_37 [2] : vector<2x8x8xf32> to vector<2x8xf32>
    %85 = vector.shape_cast %84 : vector<2x8xf32> to vector<2x8x1xf32>
    %86 = vector.broadcast %85 : vector<2x8x1xf32> to vector<2x8x8xf32>
    %87 = arith.subf %83, %86 : vector<2x8x8xf32>
    %88 = math.exp %87 : vector<2x8x8xf32>
    %cst_38 = arith.constant dense<0.000000e+00> : vector<2x8xf32>
    %89 = vector.multi_reduction <add>, %88, %cst_38 [2] : vector<2x8x8xf32> to vector<2x8xf32>
    %90 = vector.shape_cast %89 : vector<2x8xf32> to vector<2x8x1xf32>
    "tpu.trace_start"() <{level = 10 : i32, message = "bqk,bkd->bqd"}> : () -> ()
    %cst_39 = arith.constant dense<0.000000e+00> : vector<2x8x8xf32>
    %91 = tpu.matmul %88, %82, %cst_39 {dimension_numbers = #tpu.dot_dimension_numbers<[2], [1], [1], [2], [0, 0, 0, 1, 1, 2], [0], [0]>} : vector<2x8x8xf32>, vector<2x8x8xf32>, vector<2x8x8xf32> -> vector<2x8x8xf32>
    "tpu.trace_stop"() : () -> ()
    %92 = vector.broadcast %90 : vector<2x8x1xf32> to vector<2x8x8xf32>
    %93 = arith.divf %91, %92 : vector<2x8x8xf32>
    %94 = vector.shape_cast %93 : vector<2x8x8xf32> to vector<16x8xf32>
    %c0_40 = arith.constant 0 : index
    %c24 = arith.constant 24 : index
    %95 = vector.load %arg13[%c0_40, %c24] : memref<16x32xf32, #tpu.memory_space<vmem>>, vector<16x8xf32>
    tpu.vector_store %arg13[%c0_40, %c24], %94 {strides = array<i32>} : memref<16x32xf32, #tpu.memory_space<vmem>>, vector<16x8xf32>,
    %c0_41 = arith.constant 0 : index
    %c0_42 = arith.constant 0 : index
    %96 = vector.load %arg13[%c0_41, %c0_42] : memref<16x32xf32, #tpu.memory_space<vmem>>, vector<16x32xf32>
    %c0_43 = arith.constant 0 : index
    %c0_44 = arith.constant 0 : index
    %97 = vector.load %arg10[%c0_43, %c0_44] : memref<32x32xf32, #tpu.memory_space<vmem>>, vector<32x32xf32>
    %cst_45 = arith.constant dense<0.000000e+00> : vector<16x32xf32>
    %98 = tpu.matmul %96, %97, %cst_45 {dimension_numbers = #tpu.dot_dimension_numbers<[1], [0], [0], [1], [0, 0, 1, 1], [], []>} : vector<16x32xf32>, vector<32x32xf32>, vector<16x32xf32> -> vector<16x32xf32>
    %c0_46 = arith.constant 0 : index
    %c0_47 = arith.constant 0 : index
    %99 = vector.load %arg11[%c0_46, %c0_47] : memref<1x32xf32, #tpu.memory_space<vmem>>, vector<1x32xf32>
    %100 = vector.broadcast %99 : vector<1x32xf32> to vector<16x32xf32>
    %101 = arith.addf %98, %100 : vector<16x32xf32>
    %c0_48 = arith.constant 0 : index
    %c0_49 = arith.constant 0 : index
    %102 = vector.load %arg12[%c0_48, %c0_49] : memref<16x32xf32, #tpu.memory_space<vmem>>, vector<16x32xf32>
    tpu.vector_store %arg12[%c0_48, %c0_49], %101 {strides = array<i32>} : memref<16x32xf32, #tpu.memory_space<vmem>>, vector<16x32xf32>,
    return
  }
  func.func @transform_0(%arg0: i32) -> (i32, i32) {
    %c0_i32 = arith.constant 0 : i32
    %c0_i32_0 = arith.constant 0 : i32
    return %arg0, %c0_i32 : i32, i32
  }
  func.func @transform_1(%arg0: i32) -> (i32, i32) {
    %c0_i32 = arith.constant 0 : i32
    %c0_i32_0 = arith.constant 0 : i32
    return %arg0, %c0_i32 : i32, i32
  }
  func.func @transform_2(%arg0: i32) -> (i32, i32) {
    %c0_i32 = arith.constant 0 : i32
    %c0_i32_0 = arith.constant 0 : i32
    return %arg0, %c0_i32 : i32, i32
  }
  func.func @transform_3(%arg0: i32) -> (i32, i32) {
    %c0_i32 = arith.constant 0 : i32
    %c0_i32_0 = arith.constant 0 : i32
    %c0_i32_1 = arith.constant 0 : i32
    return %c0_i32, %c0_i32_0 : i32, i32
  }
  func.func @transform_4(%arg0: i32) -> (i32, i32) {
    %c0_i32 = arith.constant 0 : i32
    %c0_i32_0 = arith.constant 0 : i32
    %c0_i32_1 = arith.constant 0 : i32
    return %c0_i32, %c0_i32_0 : i32, i32
  }
  func.func @transform_5(%arg0: i32) -> (i32, i32) {
    %c0_i32 = arith.constant 0 : i32
    %c0_i32_0 = arith.constant 0 : i32
    %c0_i32_1 = arith.constant 0 : i32
    return %c0_i32, %c0_i32_0 : i32, i32
  }
  func.func @transform_6(%arg0: i32) -> (i32, i32) {
    %c0_i32 = arith.constant 0 : i32
    %c0_i32_0 = arith.constant 0 : i32
    %c0_i32_1 = arith.constant 0 : i32
    return %c0_i32, %c0_i32_0 : i32, i32
  }
  func.func @transform_7(%arg0: i32) -> (i32, i32) {
    %c0_i32 = arith.constant 0 : i32
    %c0_i32_0 = arith.constant 0 : i32
    %c0_i32_1 = arith.constant 0 : i32
    return %c0_i32, %c0_i32_0 : i32, i32
  }
  func.func @transform_8(%arg0: i32) -> (i32, i32) {
    %c0_i32 = arith.constant 0 : i32
    %c0_i32_0 = arith.constant 0 : i32
    %c0_i32_1 = arith.constant 0 : i32
    return %c0_i32, %c0_i32_0 : i32, i32
  }
  func.func @transform_9(%arg0: i32) -> (i32, i32) {
    %c0_i32 = arith.constant 0 : i32
    %c0_i32_0 = arith.constant 0 : i32
    %c0_i32_1 = arith.constant 0 : i32
    return %c0_i32, %c0_i32_0 : i32, i32
  }
  func.func @transform_10(%arg0: i32) -> (i32, i32) {
    %c0_i32 = arith.constant 0 : i32
    %c0_i32_0 = arith.constant 0 : i32
    %c0_i32_1 = arith.constant 0 : i32
    return %c0_i32, %c0_i32_0 : i32, i32
  }
  func.func @transform_11(%arg0: i32) -> (i32, i32) {
    %c0_i32 = arith.constant 0 : i32
    %c0_i32_0 = arith.constant 0 : i32
    return %arg0, %c0_i32 : i32, i32
  }
}

</mosaic_0001>

<bundles_post_ra>
// kernel: tpu_custom_call.1
= control target key start
LH: loop header
LB: loop body
LE: loop exit
PB: predicated region body
PF: predicated region fallthrough
CT: control target
= control target key end

     0   :  { %16 = vsyncpa [#allocation4], 0  ;;  %s1556_s0 = inlined_call_operand.hbm [shape: f32[16,32], index: 0, kind: input, shape index: {}]   ;;  %s1557_s1 = inlined_call_operand.hbm [shape: f32[16,32], index: 1, kind: input, shape index: {}]   ;;  %s1558_s2 = inlined_call_operand.hbm [shape: f32[16,32], index: 2, kind: input, shape index: {}]   ;;  %s1559_s3 = inlined_call_operand.hbm [shape: f32[32,32], index: 3, kind: input, shape index: {}]   ;;  %s1560_s4 = inlined_call_operand.vmem [shape: f32[1,32], index: 4, kind: input, shape index: {}]   ;;  %s1561_s5 = inlined_call_operand.hbm [shape: f32[32,32], index: 5, kind: input, shape index: {}]   ;;  %s1562_s6 = inlined_call_operand.vmem [shape: f32[1,32], index: 6, kind: input, shape index: {}]   ;;  %s1563_s7 = inlined_call_operand.hbm [shape: f32[32,32], index: 7, kind: input, shape index: {}]   ;;  %s1564_s8 = inlined_call_operand.vmem [shape: f32[1,32], index: 8, kind: input, shape index: {}]   ;;  %s1565_s9 = inlined_call_operand.hbm [shape: f32[32,32], index: 9, kind: input, shape index: {}]   ;;  %s1566_s10 = inlined_call_operand.vmem [shape: f32[1,32], index: 10, kind: input, shape index: {}]   ;;  %s1567_s11 = inlined_call_operand.hbm [shape: f32[16,32], index: 11, kind: output, shape index: {}]  }
   0x1   :  { %17 = vsyncpa [#allocation7], 0 }
   0x2   :  { %18 = vsyncpa [#allocation10], 0 }
   0x3   :  { %19 = vsyncpa [#allocation13], 0 }
   0x4   :  { %20 = vsyncpa [#allocation5], 0  ;;  %s38_s19 = sshll.u32 %s1557_s1, 4  ;;  %s1277_s20 = smov [#allocation6]   ;;  %s39_s19 = int_to_ptr.hbm [resolvable:$true] %s38_s19 }
   0x5   :  { %s40_s21 = sshll.u32 %s1277_s20, 4  ;;  %s64_s24 = sshll.u32 %s1559_s3, 4  ;;  %s41_s21 = int_to_ptr.vmem [resolvable:$true] %s40_s21  ;;  %s65_s24 = int_to_ptr.hbm [resolvable:$true] %s64_s24 }
   0x6   :  { %s1278_s25 = smov 128   ;;  %s1279_s26 = smov 8  }
   0x7   :  { %46 = dma.hbm_to_vmem [thread:$0]  %s39_s19, 256, %s41_s21, [#allocation7], %s1278_s25, %s1278_s25, %s1279_s26  }
   0x8   :  { %s1280_s27 = smov [#allocation9]   ;;  %s94_s1 = sshll.u32 %s1563_s7, 4  ;;  %s95_s1 = int_to_ptr.hbm [resolvable:$true] %s94_s1 }
   0x9   :  { %s66_s28 = sshll.u32 %s1280_s27, 4  ;;  %s25_s13 = sshll.u32 %s1556_s0, 4  ;;  %s67_s28 = int_to_ptr.vmem [resolvable:$true] %s66_s28  ;;  %s26_s13 = int_to_ptr.hbm [resolvable:$true] %s25_s13 }
   0xa   :  { %72 = dma.hbm_to_vmem [thread:$0]  %s65_s24, 512, %s67_s28, [#allocation10], %s1278_s25, %s1278_s25, %s1279_s26  }
   0xb   :  { %s1281_s14 = smov [#allocation12]   ;;  %s1282_s16 = smov [#allocation3]  }
   0xc   :  { %s96_s15 = sshll.u32 %s1281_s14, 4  ;;  %s27_s7 = sshll.u32 %s1282_s16, 4  ;;  %s97_s15 = int_to_ptr.vmem [resolvable:$true] %s96_s15  ;;  %s28_s7 = int_to_ptr.vmem [resolvable:$true] %s27_s7 }
   0xd   :  { %102 = dma.hbm_to_vmem [thread:$0]  %s95_s1, 512, %s97_s15, [#allocation13], %s1278_s25, %s1278_s25, %s1279_s26  }
   0xe   :  { %s51_s19 = sshll.u32 %s1558_s2, 4  ;;  %s79_s21 = sshll.u32 %s1561_s5, 4  ;;  %s52_s19 = int_to_ptr.hbm [resolvable:$true] %s51_s19  ;;  %s80_s21 = int_to_ptr.hbm [resolvable:$true] %s79_s21 }
   0xf   :  { %33 = dma.hbm_to_vmem [thread:$0]  %s26_s13, 256, %s28_s7, [#allocation4], %s1278_s25, %s1278_s25, %s1279_s26  }
  0x10   :  { %s1283_s22 = smov [#allocation8]   ;;  %s1284_s24 = smov [#allocation11]  }
  0x11   :  { %s53_s23 = sshll.u32 %s1283_s22, 4  ;;  %s81_s2 = sshll.u32 %s1284_s24, 4  ;;  %s54_s23 = int_to_ptr.vmem [resolvable:$true] %s53_s23  ;;  %s82_s2 = int_to_ptr.vmem [resolvable:$true] %s81_s2 }
  0x12   :  { %59 = dma.hbm_to_vmem [thread:$0]  %s52_s19, 256, %s54_s23, [#allocation7], %s1278_s25, %s1278_s25, %s1279_s26  }
  0x13   :  { %s109_s29 = sshll.u32 %s1565_s9, 4  ;;  %s1285_s5 = smov [#allocation14]   ;;  %s110_s29 = int_to_ptr.hbm [resolvable:$true] %s109_s29 }
  0x14   :  { %87 = dma.hbm_to_vmem [thread:$0]  %s80_s21, 512, %s82_s2, [#allocation10], %s1278_s25, %s1278_s25, %s1279_s26  }
  0x15   :  { %s111_s30 = sshll.u32 %s1285_s5, 4  ;;  %s112_s30 = int_to_ptr.vmem [resolvable:$true] %s111_s30 }
  0x16   :  { %117 = dma.hbm_to_vmem [thread:$0]  %s110_s29, 512, %s112_s30, [#allocation13], %s1278_s25, %s1278_s25, %s1279_s26  }
  0x17   :  { %1267 = dma.done.wait [#allocation4], 256  }
  0x18   :  { %1268 = vsyncadd [#allocation4], 4294967040 }
  0x19   :  { %1269 = dma.done.wait [#allocation7], 512  }
  0x1a   :  { %1270 = vsyncadd [#allocation7], 4294966784 }
  0x1b   :  { %1271 = dma.done.wait [#allocation10], 1024  }
  0x1c   :  { %1272 = vsyncadd [#allocation10], 4294966272 }
  0x1d   :  { %1273 = dma.done.wait [#allocation13], 1024  }
  0x1e   :  { %1274 = vsyncadd [#allocation13], 4294966272  ;;  %v197_v0 = vld [vmem:[#allocation11 + $0x18] sm:$0xff]  ;;  %v196_v2 = vld [vmem:[#allocation11 + $0x10] sm:$0xff]  ;;  %vm162_vm0 = vcmask 261120   ;;  %vm268_vm1 = vcmask 64512  }
  0x1f   :  { %v157_v1 = vld [vmem:[#allocation9 + $0x18] sm:$0xff]  ;;  %220 = vmatpush.msra.mxu1 %v197_v0  ;;  %v156_v3 = vld [vmem:[#allocation9 + $0x10] sm:$0xff]  ;;  %1015 = vmatpush.msra.mxu2 %v197_v0  ;;  %v195_v4 = vld [vmem:[#allocation11 + $0x8] sm:$0xff]  ;;  %s1286_s13 = smov 112   ;;  %s1287_s14 = smov 120  }
  0x20   :  { %181 = vmatpush.msra.mxu0 %v157_v1  ;;  %v155_v5 = vld [vmem:[#allocation9 + $0x8] sm:$0xff]  ;;  %v194_v6 = vld [vmem:[#allocation11] sm:$0xff]  ;;  %v148_v9 = vld [vmem:[#allocation3] sm:$0xff]  ;;  %s1288_s15 = smov 104   ;;  %s1290_s16 = smov 24  }
  0x21   :  { %221 = vmatpush.msra.mxu1 %v196_v2  ;;  %1016 = vmatpush.msra.mxu2 %v196_v2  ;;  %v154_v7 = vld [vmem:[#allocation9] sm:$0xff]  ;;  %v151_v10 = vld [vmem:[#allocation6 + $0x8] sm:$0xff]  ;;  %v234_v11 = vld [vmem:[#allocation12 + $0x18] sm:$0xff]  ;;  %s1291_s18 = smov [#allocation15]   ;;  %s967_s21 = sshll.u32 %s1567_s11, 4  ;;  %s968_s21 = int_to_ptr.hbm [resolvable:$true] %s967_s21 }
  0x22   :  { %182 = vmatpush.msra.mxu0 %v156_v3  ;;  %v150_v8 = vld [vmem:[#allocation6] sm:$0xff]  ;;  %v233_v12 = vld [vmem:[#allocation12 + $0x10] sm:$0xff]  ;;  %v232_v13 = vld [vmem:[#allocation12 + $0x8] sm:$0xff]  ;;  %s965_s19 = sshll.u32 %s1291_s18, 4  ;;  %s966_s19 = int_to_ptr.vmem [resolvable:$true] %s965_s19 }
  0x23   :  { %222 = vmatpush.msra.mxu1 %v195_v4  ;;  %1017 = vmatpush.msra.mxu2 %v195_v4  ;;  %v149_v14 = vld [vmem:[#allocation3 + $0x8] sm:$0xff]  ;;  %v231_v15 = vld [vmem:[#allocation12] sm:$0xff]  ;;  %v152_v16 = vld [vmem:[#allocation8] sm:$0xff] }
  0x24   :  { %183 = vmatpush.msra.mxu0 %v155_v5  ;;  %v153_v17 = vld [vmem:[#allocation8 + $0x8] sm:$0xff]  ;;  %v1039_v18 = vld [vmem:[%s1562_s6] ss:$0 sm:$0xff] }
  0x25   :  { %223 = vmatpush.msra.mxu1 %v194_v6  ;;  %1018 = vmatpush.msra.mxu2 %v194_v6  ;;  %v1040_v19 = vld [vmem:[%s1560_s4] ss:$0 sm:$0xff] }
  0x26   :  { %184 = vmatpush.msra.mxu0 %v154_v7  ;;  %985 = vmatmul.msk.f32.vlgmr.msra.gmra.mxu1 %vm162_vm0, %v150_v8  ;;  %v1041_v30 = vld [vmem:[%s1564_s8] ss:$0 sm:$0xff]  ;;  %s1289_s8 = smov 16  }
  0x27   :  { %983 = vmatmul.msk.f32.vlgmr.msra.gmra.mxu0 %vm162_vm0, %v148_v9  ;;  %986 = vmatmul.msk.f32.vlgmr.msra.gmra.mxu2 %vm162_vm0, %v151_v10 }
  0x28   :  { %257 = vmatpush.msrb.mxu2 %v234_v11 }
  0x2a   :  { %258 = vmatpush.msrb.mxu2 %v233_v12 }
  0x2c   :  { %259 = vmatpush.msrb.mxu2 %v232_v13 }
  0x2e   :  { %260 = vmatpush.msrb.mxu2 %v231_v15 }
  0x2f   :  { %984 = vmatmul.msk.f32.gmra.mxu0 %vm162_vm0, %v149_v14  ;;  %987 = vmatmul.msk.f32.vlgmr.msrb.gmra.mxu2 %vm162_vm0, %v152_v16 }
  0x37   :  { %988 = vmatmul.msk.f32.gmra.mxu2 %vm162_vm0, %v153_v17 }
  0xa3   :  { %v225_v20 = vpop.f32.mrf.mxu1 }
  0xa4   :  { %v186_v21 = vpop.f32.mrf.mxu0  ;;  %v226_v22 = vadd.f32 %v1039_v18, %v225_v20 }
  0xa5   :  { %v187_v23 = vadd.f32 %v1040_v19, %v186_v21 }
  0xa6   :  { %588 = vrot.lane.b32.xlu1 %v226_v22, %s1286_s13  ;;  %419 = vrot.lane.b32.xlu0 %v226_v22, %s1287_s14 }
  0xa7   :  { %v192_v24 = vmul.f32 0.35355338, %v187_v23  ;;  %989 = vmatpush.xpose.msk.msra.mxu3 %vm268_vm1, %v226_v22 }
  0xa9   :  { %586 = vrot.lane.b32.xlu2 %v192_v24, %s1286_s13 }
  0xaa   :  { %990 = vmatmul.msk.f32.vlgmr.msra.gmra.mxu3 %vm268_vm1, %v192_v24  ;;  %v228_v25 = vpop.f32.mrf.mxu2 }
  0xab   :  { %v229_v27 = vadd.f32 %v1039_v18, %v228_v25 }
  0xac   :  { %v189_v26 = vpop.f32.mrf.mxu0 }
  0xad   :  { %v190_v28 = vadd.f32 %v1040_v19, %v189_v26  ;;  %991 = vmatpush.xpose.msk.msrb.mxu3 %vm268_vm1, %v229_v27 }
  0xae   :  { %447 = vrot.lane.b32.xlu1 %v229_v27, %s1287_s14  ;;  %417 = vrot.lane.b32.xlu0 %v192_v24, %s1287_s14 }
  0xaf   :  { %v193_v29 = vmul.f32 0.35355338, %v190_v28 }
  0xb1   :  { %445 = vrot.lane.b32.xlu2 %v193_v29, %s1287_s14 }
  0xb2   :  { %992 = vmatmul.msk.f32.vlgmr.msrb.gmra.mxu3 %vm268_vm1, %v193_v29  ;;  %v262_v31 = vpop.f32.mrf.mxu2 }
  0xb3   :  { %v1415_v32 = vadd.f32 %v1041_v30, %v262_v31 }
  0xb5   :  { %357 = vmatpush.msra.mxu3 %v1415_v32 }
  0xb6   :  { %755 = vrot.lane.b32.xlu1 %v226_v22, %s1288_s15  ;;  %616 = vrot.lane.b32.xlu0 %v229_v27, %s1286_s13 }
  0xb9   :  { %614 = vrot.lane.b32.xlu2 %v193_v29, %s1286_s13 }
  0xba   :  { %v265_v33 = vpop.f32.mrf.mxu2 }
  0xbb   :  { %v1421_v34 = vadd.f32 %v1041_v30, %v265_v33 }
  0xbd   :  { %380 = vmatpush.msrb.mxu0 %v1421_v34  ;;  %v1034_v35 = vpack.i.bf16 %v1421_v34, %v1415_v32 }
  0xbe   :  { %783 = vrot.lane.b32.xlu1 %v229_v27, %s1288_s15  ;;  %753 = vrot.lane.b32.xlu0 %v192_v24, %s1288_s15 }
  0xc1   :  { %781 = vrot.lane.b32.xlu2 %v193_v29, %s1288_s15 }
  0xc6   :  { %1035 = vrot.lane.b32.xlu0 %v1034_v35, %s1287_s14 }
 0x103   :  { %v587_v36 = vpop.permute.xlu2 %586 }
 0x10b   :  { %v446_v39 = vpop.permute.xlu2 %445 }
 0x113   :  { %v615_v44 = vpop.permute.xlu2 %614 }
 0x118   :  { %v589_v37 = vpop.permute.xlu1 %588  ;;  %v420_v38 = vpop.permute.xlu0 %419 }
 0x119   :  { %995 = vmatpush.xpose.msk.msrb.mxu1 %vm268_vm1, %v420_v38 }
 0x11b   :  { %v782_v49 = vpop.permute.xlu2 %781 }
 0x11d   :  { %1001 = vmatpush.xpose.msk.msra.mxu1 %vm268_vm1, %v589_v37 }
 0x120   :  { %v448_v40 = vpop.permute.xlu1 %447  ;;  %v418_v41 = vpop.permute.xlu0 %417 }
 0x121   :  { %997 = vmatpush.xpose.msk.msra.mxu2 %vm268_vm1, %v448_v40  ;;  %996 = vmatmul.msk.f32.vlgmr.msrb.gmra.mxu1 %vm268_vm1, %v418_v41 }
 0x124   :  { %998 = vmatmul.msk.f32.vlgmr.msra.gmra.mxu2 %vm268_vm1, %v446_v39 }
 0x128   :  { %v756_v42 = vpop.permute.xlu1 %755  ;;  %v617_v43 = vpop.permute.xlu0 %616 }
 0x129   :  { %1007 = vmatpush.xpose.msk.msrb.mxu1 %vm268_vm1, %v756_v42  ;;  %1003 = vmatpush.xpose.msk.msrb.mxu2 %vm268_vm1, %v617_v43 }
 0x12a   :  { %1002 = vmatmul.msk.f32.vlgmr.msra.gmra.mxu1 %vm268_vm1, %v587_v36 }
 0x12c   :  { %1004 = vmatmul.msk.f32.vlgmr.msrb.gmra.mxu2 %vm268_vm1, %v615_v44 }
 0x12d   :  { %v292_v45 = vpop.f32.mrf.mxu3 }
 0x12e   :  { %v321_v46 = vsel %vm268_vm1, %v292_v45, -inf }
 0x12f   :  { %322 = vmax.xlane.f32.xlu0 %v321_v46 }
 0x130   :  { %v784_v47 = vpop.permute.xlu1 %783  ;;  %v754_v48 = vpop.permute.xlu0 %753 }
 0x131   :  { %1009 = vmatpush.xpose.msk.msra.mxu2 %vm268_vm1, %v784_v47 }
 0x132   :  { %1008 = vmatmul.msk.f32.vlgmr.msrb.gmra.mxu1 %vm268_vm1, %v754_v48 }
 0x134   :  { %1010 = vmatmul.msk.f32.vlgmr.msra.gmra.mxu2 %vm268_vm1, %v782_v49 }
 0x135   :  { %v318_v50 = vpop.f32.mrf.mxu3 }
 0x136   :  { %v324_v51 = vsel %vm268_vm1, %v318_v50, -inf }
 0x137   :  { %325 = vmax.xlane.f32.xlu2 %v324_v51 }
 0x138   :  { %v1036_v52 = vpop.permute.xlu0 %1035 }
 0x139   :  { %v1038_v53 = vunpack.i.h.bf16 %v1036_v52  ;;  %v1037_v54 = vunpack.i.l.bf16 %v1036_v52 }
 0x13b   :  { %513 = vmatpush.msrb.mxu3 %v1037_v54  ;;  %540 = vmatpush.msra.mxu0 %v1038_v53 }
 0x143   :  { %827 = vrot.lane.b32.xlu0 %v1415_v32, %s1288_s15 }
 0x14b   :  { %686 = vrot.lane.b32.xlu0 %v1421_v34, %s1286_s13 }
 0x19e   :  { %v442_v55 = vpop.f32.mrf.mxu1 }
 0x19f   :  { %v473_v56 = vsel %vm268_vm1, %v442_v55, -inf }
 0x1a0   :  { %474 = vmax.xlane.f32.xlu1 %v473_v56 }
 0x1a2   :  { %v323_v57 = vpop.xlane.xlu0 %322 }
 0x1a3   :  { %v327_v58 = vsub.f32 %v292_v45, %v323_v57 }
 0x1a5   :  { %v329_v59 = vmul.f32 1.442695, %v327_v58 }
 0x1a7   :  { %1043 = vpow2.f32 %v329_v59  ;;  %v611_v60 = vpop.f32.mrf.mxu1  ;;  %v470_v61 = vpop.f32.mrf.mxu2 }
 0x1a8   :  { %v642_v62 = vsel %vm268_vm1, %v611_v60, -inf  ;;  %v476_v63 = vsel %vm268_vm1, %v470_v61, -inf }
 0x1a9   :  { %643 = vmax.xlane.f32.xlu2 %v642_v62  ;;  %477 = vmax.xlane.f32.xlu1 %v476_v63 }
 0x1aa   :  { %v326_v0 = vpop.xlane.xlu2 %325 }
 0x1ab   :  { %v328_v1 = vsub.f32 %v318_v50, %v326_v0 }
 0x1ad   :  { %v1450_v2 = vpop.eup %1043  ;;  %v331_v3 = vmul.f32 1.442695, %v328_v1 }
 0x1ae   :  { %993 = vmatmul.msk.f32.vlgmr.msra.gmra.mxu3 %vm268_vm1, %v1450_v2  ;;  %v333_v44 = vsel %vm268_vm1, %v1450_v2, 0.0 }
 0x1af   :  { %1045 = vpow2.f32 %v331_v3  ;;  %v778_v4 = vpop.f32.mrf.mxu1  ;;  %v639_v6 = vpop.f32.mrf.mxu2 }
 0x1b0   :  { %v809_v5 = vsel %vm268_vm1, %v778_v4, -inf  ;;  %v645_v8 = vsel %vm268_vm1, %v639_v6, -inf }
 0x1b1   :  { %810 = vmax.xlane.f32.xlu2 %v809_v5 }
 0x1b5   :  { %v1455_v7 = vpop.eup %1045  ;;  %v828_v9 = vpop.permute.xlu0 %827 }
 0x1b6   :  { %994 = vmatmul.msk.f32.vlgmr.msrb.gmra.mxu0 %vm268_vm1, %v1455_v7  ;;  %v336_v46 = vsel %vm268_vm1, %v1455_v7, 0.0 }
 0x1b7   :  { %v806_v10 = vpop.f32.mrf.mxu2 }
 0x1b8   :  { %v812_v11 = vsel %vm268_vm1, %v806_v10, -inf }
 0x1b9   :  { %646 = vmax.xlane.f32.xlu2 %v645_v8 }
 0x1bd   :  { %v687_v12 = vpop.permute.xlu0 %686 }
 0x1be   :  { %707 = vmatpush.msrb.mxu0 %v687_v12 }
 0x1c1   :  { %813 = vmax.xlane.f32.xlu2 %v812_v11 }
 0x1c2   :  { %660 = vrot.lane.b32.xlu1 %v1415_v32, %s1286_s13 }
 0x1d9   :  { %853 = vrot.lane.b32.xlu2 %v1421_v34, %s1288_s15 }
 0x213   :  { %v475_v13 = vpop.xlane.xlu1 %474 }
 0x214   :  { %v479_v14 = vsub.f32 %v442_v55, %v475_v13 }
 0x216   :  { %v481_v15 = vmul.f32 1.442695, %v479_v14 }
 0x218   :  { %1047 = vpow2.f32 %v481_v15 }
 0x21c   :  { %v644_v16 = vpop.xlane.xlu2 %643  ;;  %v478_v17 = vpop.xlane.xlu1 %477 }
 0x21d   :  { %v648_v18 = vsub.f32 %v611_v60, %v644_v16  ;;  %v480_v19 = vsub.f32 %v470_v61, %v478_v17 }
 0x21e   :  { %v1048_v20 = vpop.eup %1047 }
 0x21f   :  { %v650_v21 = vmul.f32 1.442695, %v648_v18  ;;  %v483_v22 = vmul.f32 1.442695, %v480_v19  ;;  %999 = vmatmul.msk.f32.vlgmr.msrb.gmra.mxu3 %vm268_vm1, %v1048_v20  ;;  %v485_v23 = vsel %vm268_vm1, %v1048_v20, 0.0 }
 0x220   :  { %486 = vadd.xlane.f32.xlu1 %v485_v23 }
 0x221   :  { %1049 = vpow2.f32 %v650_v21 }
 0x222   :  { %1051 = vpow2.f32 %v483_v22 }
 0x224   :  { %v811_v24 = vpop.xlane.xlu2 %810 }
 0x225   :  { %v815_v25 = vsub.f32 %v778_v4, %v811_v24 }
 0x227   :  { %v1050_v26 = vpop.eup %1049  ;;  %v817_v27 = vmul.f32 1.442695, %v815_v25 }
 0x228   :  { %v1052_v28 = vpop.eup %1051  ;;  %v654_v29 = vsel %vm268_vm1, %v1050_v26, 0.0 }
 0x229   :  { %1053 = vpow2.f32 %v817_v27  ;;  %1000 = vmatmul.msk.f32.vlgmr.msra.gmra.mxu0 %vm268_vm1, %v1052_v28  ;;  %655 = vadd.xlane.f32.xlu0 %v654_v29  ;;  %v488_v30 = vsel %vm268_vm1, %v1052_v28, 0.0 }
 0x22a   :  { %489 = vadd.xlane.f32.xlu1 %v488_v30 }
 0x22c   :  { %v647_v31 = vpop.xlane.xlu2 %646 }
 0x22d   :  { %v649_v32 = vsub.f32 %v639_v6, %v647_v31 }
 0x22f   :  { %v1054_v33 = vpop.eup %1053  ;;  %v652_v34 = vmul.f32 1.442695, %v649_v32 }
 0x230   :  { %v821_v35 = vsel %vm268_vm1, %v1054_v33, 0.0 }
 0x231   :  { %1055 = vpow2.f32 %v652_v34  ;;  %822 = vadd.xlane.f32.xlu2 %v821_v35  ;;  %v1483_v51 = vpop.f32.mrf.mxu3 }
 0x233   :  { %v1489_v2 = vpop.f32.mrf.mxu0 }
 0x234   :  { %v814_v36 = vpop.xlane.xlu2 %813  ;;  %v661_v37 = vpop.permute.xlu1 %660 }
 0x235   :  { %v816_v38 = vsub.f32 %v806_v10, %v814_v36  ;;  %681 = vmatpush.msra.mxu3 %v661_v37 }
 0x236   :  { %1005 = vmatmul.msk.f32.vlgmr.msra.gmra.mxu3 %vm268_vm1, %v1050_v26 }
 0x237   :  { %v1056_v39 = vpop.eup %1055  ;;  %v819_v40 = vmul.f32 1.442695, %v816_v38  ;;  %848 = vmatpush.msrb.mxu3 %v828_v9 }
 0x238   :  { %1006 = vmatmul.msk.f32.vlgmr.msrb.gmra.mxu0 %vm268_vm1, %v1056_v39  ;;  %v657_v41 = vsel %vm268_vm1, %v1056_v39, 0.0 }
 0x239   :  { %1057 = vpow2.f32 %v819_v40  ;;  %658 = vadd.xlane.f32.xlu0 %v657_v41 }
 0x23c   :  { %v854_v42 = vpop.permute.xlu2 %853 }
 0x23d   :  { %874 = vmatpush.msra.mxu0 %v854_v42 }
 0x23e   :  { %1011 = vmatmul.msk.f32.vlgmr.msrb.gmra.mxu3 %vm268_vm1, %v1054_v33 }
 0x23f   :  { %v1058_v43 = vpop.eup %1057 }
 0x240   :  { %1012 = vmatmul.msk.f32.vlgmr.msra.gmra.mxu0 %vm268_vm1, %v1058_v43  ;;  %v824_v45 = vsel %vm268_vm1, %v1058_v43, 0.0 }
 0x241   :  { %334 = vadd.xlane.f32.xlu0 %v333_v44  ;;  %825 = vadd.xlane.f32.xlu1 %v824_v45 }
 0x249   :  { %337 = vadd.xlane.f32.xlu1 %v336_v46 }
 0x293   :  { %v487_v47 = vpop.xlane.xlu1 %486 }
 0x294   :  { %1059 = vrcp.f32 %v487_v47  ;;  %v556_v54 = vand.u32 2147483648, %v487_v47  ;;  %v554_v56 = vand.u32 2147483647, %v487_v47  ;;  %vm550_vm3 = vweird.f32 %v487_v47 }
 0x296   :  { %v557_v59 = vor.u32 1.1754944e-38, %v556_v54  ;;  %vm555_vm5 = vcmp.eq.f32.partialorder %v554_v56, 8.507059e+37 }
 0x29a   :  { %v1060_v48 = vpop.eup %1059 }
 0x29b   :  { %v546_v49 = vmul.f32 %v1060_v48, %v487_v47  ;;  %vm551_vm2 = vweird.f32 %v1060_v48 }
 0x29c   :  { %v1481_v50 = vpop.xlane.xlu0 %655  ;;  %vm552_vm4 = vmor %vm550_vm3, %vm551_vm2 }
 0x29d   :  { %1061 = vrcp.f32 %v1481_v50  ;;  %v490_v52 = vpop.xlane.xlu1 %489  ;;  %v547_v53 = vsub.f32 1.0, %v546_v49  ;;  %v723_v23 = vand.u32 2147483648, %v1481_v50  ;;  %vm717_vm11 = vweird.f32 %v1481_v50 }
 0x29e   :  { %1063 = vrcp.f32 %v490_v52  ;;  %v571_v6 = vand.u32 2147483648, %v490_v52  ;;  %v569_v8 = vand.u32 2147483647, %v490_v52  ;;  %vm565_vm7 = vweird.f32 %v490_v52 }
 0x29f   :  { %v548_v55 = vmul.f32 %v1060_v48, %v547_v53  ;;  %v721_v27 = vand.u32 2147483647, %v1481_v50  ;;  %v724_v31 = vor.u32 1.1754944e-38, %v723_v23 }
 0x2a0   :  { %v572_v12 = vor.u32 1.1754944e-38, %v571_v6  ;;  %vm570_vm9 = vcmp.eq.f32.partialorder %v569_v8, 8.507059e+37 }
 0x2a1   :  { %v549_v57 = vadd.f32 %v1060_v48, %v548_v55  ;;  %vm722_vm14 = vcmp.eq.f32.partialorder %v721_v27, 8.507059e+37 }
 0x2a2   :  { %v515_v0 = vpop.f32.mrf.mxu3 }
 0x2a3   :  { %v1062_v58 = vpop.eup %1061  ;;  %v553_v61 = vsel %vm552_vm4, %v1060_v48, %v549_v57 }
 0x2a4   :  { %v1064_v60 = vpop.eup %1063  ;;  %v1486_v62 = vpop.xlane.xlu2 %822  ;;  %v558_v1 = vsel %vm555_vm5, %v557_v59, %v553_v61  ;;  %v713_v3 = vmul.f32 %v1062_v58, %v1481_v50  ;;  %vm718_vm10 = vweird.f32 %v1062_v58 }
 0x2a5   :  { %v561_v63 = vmul.f32 %v1064_v60, %v490_v52  ;;  %1065 = vrcp.f32 %v1486_v62  ;;  %v559_v4 = vmul.f32 %v558_v1, %v515_v0  ;;  %vm566_vm6 = vweird.f32 %v1064_v60  ;;  %vm719_vm12 = vmor %vm717_vm11, %vm718_vm10 }
 0x2a6   :  { %v714_v9 = vsub.f32 1.0, %v713_v3  ;;  %vm567_vm8 = vmor %vm565_vm7, %vm566_vm6  ;;  %v542_v16 = vpop.f32.mrf.mxu0  ;;  %v888_v33 = vand.u32 2147483647, %v1486_v62  ;;  %v890_v43 = vand.u32 2147483648, %v1486_v62  ;;  %vm884_vm4 = vweird.f32 %v1486_v62 }
 0x2a7   :  { %v562_v5 = vsub.f32 1.0, %v561_v63  ;;  %577 = vrot.lane.b32.xlu0 %v559_v4, %s1279_s26 }
 0x2a8   :  { %v715_v18 = vmul.f32 %v1062_v58, %v714_v9  ;;  %vm889_vm7 = vcmp.eq.f32.partialorder %v888_v33, 8.507059e+37 }
 0x2a9   :  { %v563_v7 = vmul.f32 %v1064_v60, %v562_v5 }
 0x2aa   :  { %v716_v21 = vadd.f32 %v1062_v58, %v715_v18 }
 0x2ab   :  { %v1493_v10 = vpop.eup %1065  ;;  %v564_v11 = vadd.f32 %v1064_v60, %v563_v7 }
 0x2ac   :  { %v659_v13 = vpop.xlane.xlu0 %658  ;;  %v880_v15 = vmul.f32 %v1493_v10, %v1486_v62  ;;  %v720_v29 = vsel %vm719_vm12, %v1062_v58, %v716_v21  ;;  %vm885_vm2 = vweird.f32 %v1493_v10  ;;  %v891_v58 = vor.u32 1.1754944e-38, %v890_v43 }
 0x2ad   :  { %v568_v14 = vsel %vm567_vm8, %v1064_v60, %v564_v11  ;;  %1067 = vrcp.f32 %v659_v13  ;;  %vm732_vm15 = vweird.f32 %v659_v13  ;;  %v738_v34 = vand.u32 2147483648, %v659_v13  ;;  %vm1524_vm5 = vmor %vm884_vm4, %vm885_vm2 }
 0x2ae   :  { %v573_v17 = vsel %vm570_vm9, %v572_v12, %v568_v14  ;;  %v881_v20 = vsub.f32 1.0, %v880_v15  ;;  %v725_v36 = vsel %vm722_vm14, %v724_v31, %v720_v29  ;;  %v736_v38 = vand.u32 2147483647, %v659_v13  ;;  %v924_v29 = vld [vmem:[#allocation14 + $0x10] sm:$0xff]  ;;  %v922_v31 = vld [vmem:[#allocation14] sm:$0xff] }
 0x2af   :  { %v574_v19 = vmul.f32 %v573_v17, %v542_v16  ;;  %v739_v50 = vor.u32 1.1754944e-38, %v738_v34 }
 0x2b0   :  { %v882_v30 = vmul.f32 %v1493_v10, %v881_v20  ;;  %vm737_vm6 = vcmp.eq.f32.partialorder %v736_v38, 8.507059e+37 }
 0x2b1   :  { %579 = vrot.lane.b32.xlu0 %v574_v19, %s1279_s26 }
 0x2b2   :  { %v883_v40 = vadd.f32 %v1493_v10, %v882_v30  ;;  %v923_v30 = vld [vmem:[#allocation14 + $0x8] sm:$0xff] }
 0x2b3   :  { %v1068_v22 = vpop.eup %1067 }
 0x2b4   :  { %v728_v24 = vmul.f32 %v1068_v22, %v659_v13  ;;  %v1499_v25 = vpop.xlane.xlu0 %334  ;;  %v1501_v26 = vpop.xlane.xlu1 %825  ;;  %vm733_vm13 = vweird.f32 %v1068_v22  ;;  %v887_v54 = vsel %vm1524_vm5, %v1493_v10, %v883_v40 }
 0x2b5   :  { %1069 = vrcp.f32 %v1499_v25  ;;  %vm1511_vm3 = vmor %vm732_vm15, %vm733_vm13  ;;  %v709_v46 = vpop.f32.mrf.mxu0  ;;  %v396_v55 = vand.u32 2147483648, %v1499_v25  ;;  %v394_v60 = vand.u32 2147483647, %v1499_v25  ;;  %v905_v61 = vand.u32 2147483648, %v1501_v26 }
 0x2b6   :  { %v729_v28 = vsub.f32 1.0, %v728_v24  ;;  %1071 = vrcp.f32 %v1501_v26  ;;  %v903_v63 = vand.u32 2147483647, %v1501_v26  ;;  %v892_v1 = vsel %vm889_vm7, %v891_v58, %v887_v54 }
 0x2b7   :  { %vm390_vm10 = vweird.f32 %v1499_v25  ;;  %v397_v7 = vor.u32 1.1754944e-38, %v396_v55  ;;  %vm899_vm12 = vweird.f32 %v1501_v26  ;;  %vm395_vm13 = vcmp.eq.f32.partialorder %v394_v60, 8.507059e+37 }
 0x2b8   :  { %v730_v32 = vmul.f32 %v1068_v22, %v729_v28  ;;  %v906_v11 = vor.u32 1.1754944e-38, %v905_v61  ;;  %vm904_vm15 = vcmp.eq.f32.partialorder %v903_v63, 8.507059e+37  ;;  %vm750_vm7 = vcmask 195712  }
 0x2b9   :  { %v683_v35 = vpop.f32.mrf.mxu3 }
 0x2ba   :  { %v731_v37 = vadd.f32 %v1068_v22, %v730_v32  ;;  %v726_v39 = vmul.f32 %v725_v36, %v683_v35 }
 0x2bb   :  { %v1070_v41 = vpop.eup %1069 }
 0x2bc   :  { %v1072_v44 = vpop.eup %1071  ;;  %v386_v45 = vmul.f32 %v1070_v41, %v1499_v25  ;;  %v735_v47 = vsel %vm1511_vm3, %v1068_v22, %v731_v37  ;;  %v338_v48 = vpop.xlane.xlu1 %337  ;;  %744 = vrot.lane.b32.xlu2 %v726_v39, %s1289_s8  ;;  %vm391_vm8 = vweird.f32 %v1070_v41  ;;  %v1042_v37 = vld [vmem:[%s1566_s10] ss:$0 sm:$0xff] }
 0x2bd   :  { %v895_v49 = vmul.f32 %v1072_v44, %v1501_v26  ;;  %1073 = vrcp.f32 %v338_v48  ;;  %v740_v57 = vsel %vm737_vm6, %v739_v50, %v735_v47  ;;  %vm900_vm9 = vweird.f32 %v1072_v44  ;;  %vm392_vm11 = vmor %vm390_vm10, %vm391_vm8  ;;  %v876_v15 = vpop.f32.mrf.mxu0 }
 0x2be   :  { %v387_v53 = vsub.f32 1.0, %v386_v45  ;;  %v741_v4 = vmul.f32 %v740_v57, %v709_v46  ;;  %vm901_vm14 = vmor %vm899_vm12, %vm900_vm9  ;;  %v411_v18 = vand.u32 2147483648, %v338_v48  ;;  %v409_v21 = vand.u32 2147483647, %v338_v48 }
 0x2bf   :  { %v896_v56 = vsub.f32 1.0, %v895_v49  ;;  %vm405_vm3 = vweird.f32 %v338_v48  ;;  %vm583_vm6 = vcmask 130112   ;;  %vm917_vm8 = vcmask 261312  }
 0x2c0   :  { %v388_v59 = vmul.f32 %v1070_v41, %v387_v53  ;;  %v412_v23 = vor.u32 1.1754944e-38, %v411_v18  ;;  %vm410_vm5 = vcmp.eq.f32.partialorder %v409_v21, 8.507059e+37 }
 0x2c1   :  { %v897_v62 = vmul.f32 %v1072_v44, %v896_v56  ;;  %v850_v0 = vpop.f32.mrf.mxu3 }
 0x2c2   :  { %v389_v3 = vadd.f32 %v1070_v41, %v388_v59  ;;  %v893_v5 = vmul.f32 %v892_v1, %v850_v0 }
 0x2c3   :  { %v1074_v6 = vpop.eup %1073  ;;  %v898_v8 = vadd.f32 %v1072_v44, %v897_v62 }
 0x2c4   :  { %v393_v9 = vsel %vm392_vm11, %v1070_v41, %v389_v3  ;;  %v401_v10 = vmul.f32 %v1074_v6, %v338_v48  ;;  %746 = vrot.lane.b32.xlu2 %v741_v4, %s1289_s8  ;;  %911 = vrot.lane.b32.xlu1 %v893_v5, %s1290_s16  ;;  %vm406_vm2 = vweird.f32 %v1074_v6 }
 0x2c5   :  { %v398_v12 = vsel %vm395_vm13, %v397_v7, %v393_v9  ;;  %v902_v13 = vsel %vm901_vm14, %v1072_v44, %v898_v8  ;;  %vm407_vm4 = vmor %vm405_vm3, %vm406_vm2 }
 0x2c6   :  { %v402_v14 = vsub.f32 1.0, %v401_v10  ;;  %v907_v16 = vsel %vm904_vm15, %v906_v11, %v902_v13  ;;  %v399_v17 = vmul.f32 %v398_v12, %v1483_v51  ;;  %v925_v51 = vld [vmem:[#allocation14 + $0x18] sm:$0xff] }
 0x2c7   :  { %v908_v19 = vmul.f32 %v907_v16, %v876_v15  ;;  %948 = vmatpush.msra.mxu1 %v925_v51 }
 0x2c8   :  { %v403_v20 = vmul.f32 %v1074_v6, %v402_v14  ;;  %415 = vst.msk [vmem:[#allocation2] sm:$0xff] %vm268_vm1, %v399_v17 }
 0x2c9   :  { %913 = vrot.lane.b32.xlu0 %v908_v19, %s1290_s16  ;;  %949 = vmatpush.msra.mxu1 %v924_v29 }
 0x2ca   :  { %v404_v22 = vadd.f32 %v1074_v6, %v403_v20 }
 0x2cb   :  { %950 = vmatpush.msra.mxu1 %v923_v30 }
 0x2cc   :  { %v408_v24 = vsel %vm407_vm4, %v1074_v6, %v404_v22 }
 0x2cd   :  { %v413_v25 = vsel %vm410_vm5, %v412_v23, %v408_v24  ;;  %951 = vmatpush.msra.mxu1 %v922_v31 }
 0x2ce   :  { %v414_v26 = vmul.f32 %v413_v25, %v1489_v2 }
 0x2d0   :  { %416 = vst.msk [vmem:[#allocation2 + $0x8] sm:$0xff] %vm268_vm1, %v414_v26 }
 0x316   :  { %v745_v27 = vpop.permute.xlu2 %744 }
 0x319   :  { %v578_v28 = vpop.permute.xlu0 %577 }
 0x31a   :  { %584 = vst.msk [vmem:[#allocation2] sm:$0xff] %vm583_vm6, %v578_v28 }
 0x31b   :  { %751 = vst.msk [vmem:[#allocation2] sm:$0xff] %vm750_vm7, %v745_v27 }
 0x31e   :  { %v747_v33 = vpop.permute.xlu2 %746 }
 0x323   :  { %v580_v32 = vpop.permute.xlu0 %579 }
 0x324   :  { %585 = vst.msk [vmem:[#allocation2 + $0x8] sm:$0xff] %vm583_vm6, %v580_v32 }
 0x325   :  { %752 = vst.msk [vmem:[#allocation2 + $0x8] sm:$0xff] %vm750_vm7, %v747_v33 }
 0x336   :  { %v912_v2 = vpop.permute.xlu1 %911 }
 0x337   :  { %918 = vst.msk [vmem:[#allocation2] sm:$0xff] %vm917_vm8, %v912_v2 }
 0x33b   :  { %v914_v34 = vpop.permute.xlu0 %913 }
 0x33c   :  { %919 = vst.msk [vmem:[#allocation2 + $0x8] sm:$0xff] %vm917_vm8, %v914_v34 }
 0x33e   :  { %v920_v35 = vld [vmem:[#allocation2] sm:$0xff] }
 0x33f   :  { %1013 = vmatmul.msk.f32.vlgmr.msra.gmra.mxu1 %vm162_vm0, %v920_v35 }
 0x343   :  { %v921_v36 = vld [vmem:[#allocation2 + $0x8] sm:$0xff] }
 0x347   :  { %1014 = vmatmul.msk.f32.gmra.mxu1 %vm162_vm0, %v921_v36 }
 0x3bc   :  { %v953_v38 = vpop.f32.mrf.mxu1 }
 0x3bd   :  { %v954_v39 = vadd.f32 %v1042_v37, %v953_v38 }
 0x3bf   :  { %959 = vst.msk [vmem:[#allocation15] sm:$0xff] %vm162_vm0, %v954_v39 }
 0x3c4   :  { %v956_v40 = vpop.f32.mrf.mxu1 }
 0x3c5   :  { %v957_v41 = vadd.f32 %v1042_v37, %v956_v40 }
 0x3c7   :  { %960 = vst.msk [vmem:[#allocation15 + $0x8] sm:$0xff] %vm162_vm0, %v957_v41 }
 0x3c8   :  { %973 = dma.vmem_to_hbm [thread:$0]  %s966_s19, 256, %s968_s21, [#allocation5], %s1278_s25, %s1278_s25, %s1279_s26  }
 0x3c9   :  { %1275 = dma.done.wait [#allocation5], 256  }
 0x3ca   :  { %1276 = vsyncadd [#allocation5], 4294967040 }
 0x3cb   :  { %978 = vsyncpa [#allocation4], 1 }
 0x3cc   :  { %979 = vsyncpa [#allocation7], 1 }
 0x3cd   :  { %980 = vsyncpa [#allocation10], 1 }
 0x3ce   :  { %981 = vsyncpa [#allocation13], 1 }
 0x3cf   :  { %982 = vsyncpa [#allocation5], 1 }

</bundles_post_ra>
